<compile_context>
chip_gen: v5e
topology: v5e:2x2
jax: 0.10.0
libtpu: 0.0.40
codegen_flags: <defaults>
</compile_context>

<pallas_src>
import functools

import jax
import jax.numpy as jnp
from jax.experimental import pallas as pl
from jax.experimental.pallas import tpu as pltpu


# ----------------------------- helpers --------------------------------------

def _round_up(x, m):
    return ((x + m - 1) // m) * m


def _pad2(x, rows, cols):
    return jnp.pad(x, ((0, rows - x.shape[0]), (0, cols - x.shape[1])))


def _choose_tile(n):
    # square (row, K) tile, multiple of 128, capped so double-buffered bf16
    # tiles stay far below the default scoped VMEM limit on all generations.
    return min(512, _round_up(max(n, 1), 128))


# ----------------------------- Pallas kernels -------------------------------

def _xw_kernel(x_ref, w_ref, o_ref):
    # o = X_tile @ W   (bf16 inputs, f32 MXU accumulation, bf16 out)
    o_ref[...] = jnp.dot(
        x_ref[...], w_ref[...], preferred_element_type=jnp.float32
    ).astype(o_ref.dtype)


def _aggregate_kernel(a_ref, xw_ref, b_ref, o_ref, acc_ref, *,
                      activation, valid_cols):
    # out_row_tile = act( sum_k A[i, k] @ XW[k, :]  + b )
    k = pl.program_id(1)

    @pl.when(k == 0)
    def _():
        acc_ref[...] = jnp.zeros_like(acc_ref)

    acc_ref[...] += jnp.dot(
        a_ref[...], xw_ref[...], preferred_element_type=jnp.float32)

    @pl.when(k == pl.num_programs(1) - 1)
    def _():
        h = acc_ref[...] + b_ref[...]
        if activation == "relu":
            o_ref[...] = jnp.maximum(h, 0.0).astype(o_ref.dtype)
        else:  # log_softmax over the valid (unpadded) feature columns
            col = jax.lax.broadcasted_iota(jnp.int32, h.shape, 1)
            h = jnp.where(col < valid_cols, h, jnp.float32(-1e30))
            m = jnp.max(h, axis=1, keepdims=True)
            s = h - m
            lse = jnp.log(jnp.sum(jnp.exp(s), axis=1, keepdims=True))
            o_ref[...] = (s - lse).astype(o_ref.dtype)


# ------------------------- pallas_call wrappers ------------------------------

def _dense_xw(x_p, w_p, tile_m):
    """XW = X_pad @ W_pad, row-tiled, bf16 output (feeds A_hat @ XW)."""
    n_pad, kdim = x_p.shape
    fp = w_p.shape[1]
    return pl.pallas_call(
        _xw_kernel,
        out_shape=jax.ShapeDtypeStruct((n_pad, fp), jnp.bfloat16),
        grid_spec=pltpu.PrefetchScalarGridSpec(
            num_scalar_prefetch=0,
            grid=(n_pad // tile_m,),
            in_specs=[
                pl.BlockSpec((tile_m, kdim), lambda i: (i, 0)),
                pl.BlockSpec((kdim, fp), lambda i: (0, 0)),
            ],
            out_specs=pl.BlockSpec((tile_m, fp), lambda i: (i, 0)),
        ),
        compiler_params=pltpu.CompilerParams(
            dimension_semantics=("parallel",)),
    )(x_p, w_p)


def _aggregate(a_bf, xw_bf, b_p, tile, *, activation, valid_cols, out_dtype):
    """act( A_hat @ XW + b ), tiled (rows parallel, K reduction arbitrary)."""
    n_pad = a_bf.shape[0]
    fp = xw_bf.shape[1]
    kernel = functools.partial(
        _aggregate_kernel, activation=activation, valid_cols=valid_cols)
    return pl.pallas_call(
        kernel,
        out_shape=jax.ShapeDtypeStruct((n_pad, fp), out_dtype),
        grid_spec=pltpu.PrefetchScalarGridSpec(
            num_scalar_prefetch=0,
            grid=(n_pad // tile, n_pad // tile),
            in_specs=[
                pl.BlockSpec((tile, tile), lambda i, k: (i, k)),   # A_hat tile
                pl.BlockSpec((tile, fp), lambda i, k: (k, 0)),     # XW K-tile
                pl.BlockSpec((1, fp), lambda i, k: (0, 0)),        # bias
            ],
            out_specs=pl.BlockSpec((tile, fp), lambda i, k: (i, 0)),
            scratch_shapes=[pltpu.VMEM((tile, fp), jnp.float32)],
        ),
        compiler_params=pltpu.CompilerParams(
            dimension_semantics=("parallel", "arbitrary")),
    )(a_bf, xw_bf, b_p)


# ------------------------------- glue (JAX) ----------------------------------

def build_normalized_adjacency(edge_index, edge_attr, num_nodes):
    """Dense D^-1/2 (A + I) D^-1/2 matching PyG gcn_norm.

    Matches add_remaining_self_loops semantics: existing self-loops keep their
    weight, only missing self-loops get weight 1.
    """
    src = edge_index[0]
    dst = edge_index[1]
    if edge_attr is None:
        ew = jnp.ones((edge_index.shape[1],), dtype=jnp.float32)
    else:
        ew = edge_attr.astype(jnp.float32).reshape(-1)

    is_loop = src == dst
    # per-node self-loop weight: existing loops keep their weight, else 1.0
    loop_w = jnp.ones((num_nodes,), jnp.float32)
    loop_idx = jnp.where(is_loop, src, num_nodes)          # non-loops -> OOB
    loop_w = loop_w.at[loop_idx].set(jnp.where(is_loop, ew, 1.0), mode="drop")

    # off-diagonal adjacency (messages flow src -> dst => A[dst, src])
    ew_offdiag = jnp.where(is_loop, 0.0, ew)
    a = jnp.zeros((num_nodes, num_nodes), jnp.float32).at[dst, src].add(ew_offdiag)
    a = a + jnp.diag(loop_w)

    deg = a.sum(axis=1)
    d_inv_sqrt = jnp.where(deg > 0, jax.lax.rsqrt(deg), 0.0)
    return d_inv_sqrt[:, None] * a * d_inv_sqrt[None, :]


class GCN_h1_Pallas:
    def __init__(self, in_channels, hidden_channels_1, out_channels,
                 dropout_rate_1, key):
        self.dropout_rate_1 = dropout_rate_1  # eval mode -> identity
        self.hidden = hidden_channels_1
        self.out_channels = out_channels
        k1, k2, k3, k4 = jax.random.split(key, 4)
        s1 = 1.0 / jnp.sqrt(jnp.float32(in_channels))
        s2 = 1.0 / jnp.sqrt(jnp.float32(hidden_channels_1))
        self.w1 = jax.random.uniform(k1, (in_channels, hidden_channels_1),
                                     jnp.float32, -s1, s1)
        self.b1 = jax.random.uniform(k2, (1, hidden_channels_1),
                                     jnp.float32, -s1, s1)
        self.w2 = jax.random.uniform(k3, (hidden_channels_1, out_channels),
                                     jnp.float32, -s2, s2)
        self.b2 = jax.random.uniform(k4, (1, out_channels),
                                     jnp.float32, -s2, s2)

    def __call__(self, x, edge_index, edge_attr=None):
        n, cin = x.shape
        a_hat = build_normalized_adjacency(edge_index, edge_attr, n)

        # tile / pad geometry (lane-dense 128-wide features, node dim padded
        # to a multiple of the square A_hat tile)
        tile = _choose_tile(n)
        n_pad = _round_up(n, tile)
        cin_p = _round_up(max(cin, 1), 128)
        fp1 = _round_up(self.hidden, 128)
        fp2 = _round_up(self.out_channels, 128)

        a_bf = _pad2(a_hat, n_pad, n_pad).astype(jnp.bfloat16)
        x_p = _pad2(x.astype(jnp.float32), n_pad, cin_p).astype(jnp.bfloat16)
        w1_p = _pad2(self.w1, cin_p, fp1).astype(jnp.bfloat16)
        b1_p = _pad2(self.b1, 1, fp1)                     # f32
        w2_p = _pad2(self.w2, fp1, fp2).astype(jnp.bfloat16)
        b2_p = _pad2(self.b2, 1, fp2)                     # f32

        # layer 1: relu(A_hat @ (X @ W1) + b1)   (+ eval-mode dropout = id)
        xw1 = _dense_xw(x_p, w1_p, tile)                  # (n_pad, fp1) bf16
        h = _aggregate(a_bf, xw1, b1_p, tile,
                       activation="relu", valid_cols=self.hidden,
                       out_dtype=jnp.bfloat16)            # padded cols stay 0

        # layer 2: log_softmax(A_hat @ (H @ W2) + b2, axis=1)
        xw2 = _dense_xw(h, w2_p, tile)                    # (n_pad, fp2) bf16
        out = _aggregate(a_bf, xw2, b2_p, tile,
                         activation="log_softmax", valid_cols=self.out_channels,
                         out_dtype=jnp.float32)

        return out[:n, :self.out_channels]


# --------------------------------- main --------------------------------------

if __name__ == "__main__":
    key = jax.random.PRNGKey(0)
    k_feat, k_edge, k_attr, k_param = jax.random.split(key, 4)

    num_nodes = 8
    in_channels = 4
    hidden_channels_1 = 32
    out_channels = 4
    num_edges = 16

    x = jax.random.normal(k_feat, (num_nodes, in_channels), jnp.float32)
    edge_index = jax.random.randint(k_edge, (2, num_edges), 0, num_nodes,
                                    dtype=jnp.int32)
    edge_attr = jax.random.uniform(k_attr, (num_edges,), jnp.float32, 0.1, 1.0)

    model = GCN_h1_Pallas(in_channels, hidden_channels_1, out_channels,
                          dropout_rate_1=0.5, key=k_param)

    out = model(x, edge_index, edge_attr)
    out = jax.block_until_ready(out)

    assert out.shape == (num_nodes, out_channels)
    # rows of log_softmax should exp-sum to 1
    assert jnp.allclose(jnp.exp(out).sum(axis=1), 1.0, atol=1e-3)

    print("KERNEL_OK")
</pallas_src>

<mosaic_0001>
module attributes {stable_mosaic.version = 11 : i64} {
  func.func @_xw_kernel(%arg0: i32, %arg1: memref<128x128xbf16, #tpu.memory_space<vmem>>, %arg2: memref<128x128xbf16, #tpu.memory_space<vmem>>, %arg3: memref<128x128xbf16, #tpu.memory_space<vmem>>) attributes {dimension_semantics = [#tpu.dimension_semantics<parallel>], iteration_bounds = array<i64: 1>, scalar_prefetch = 0 : i64, scratch_operands = 0 : i64, tpu.core_type = #tpu.core_type<tc>, window_params = [{transform_indices = @transform_0, window_bounds = array<i64: 128, 128>}, {pipeline_mode = #tpu.pipeline_mode<synchronous>, transform_indices = @transform_1, window_bounds = array<i64: 128, 128>}, {transform_indices = @transform_2, window_bounds = array<i64: 128, 128>}]} {
    %c0 = arith.constant 0 : index
    %c0_0 = arith.constant 0 : index
    %0 = vector.load %arg1[%c0, %c0_0] : memref<128x128xbf16, #tpu.memory_space<vmem>>, vector<128x128xbf16>
    %c0_1 = arith.constant 0 : index
    %c0_2 = arith.constant 0 : index
    %1 = vector.load %arg2[%c0_1, %c0_2] : memref<128x128xbf16, #tpu.memory_space<vmem>>, vector<128x128xbf16>
    %cst = arith.constant dense<0.000000e+00> : vector<128x128xf32>
    %2 = tpu.matmul %0, %1, %cst {dimension_numbers = #tpu.dot_dimension_numbers<[1], [0], [0], [1], [0, 0, 1, 1], [], []>} : vector<128x128xbf16>, vector<128x128xbf16>, vector<128x128xf32> -> vector<128x128xf32>
    %3 = arith.truncf %2 : vector<128x128xf32> to vector<128x128xbf16>
    %c0_3 = arith.constant 0 : index
    %c0_4 = arith.constant 0 : index
    %4 = vector.load %arg3[%c0_3, %c0_4] : memref<128x128xbf16, #tpu.memory_space<vmem>>, vector<128x128xbf16>
    tpu.vector_store %arg3[%c0_3, %c0_4], %3 {strides = array<i32>} : memref<128x128xbf16, #tpu.memory_space<vmem>>, vector<128x128xbf16>,
    return
  }
  func.func @transform_0(%arg0: i32) -> (i32, i32) {
    %c0_i32 = arith.constant 0 : i32
    %c0_i32_0 = arith.constant 0 : i32
    return %arg0, %c0_i32 : i32, i32
  }
  func.func @transform_1(%arg0: i32) -> (i32, i32) {
    %c0_i32 = arith.constant 0 : i32
    %c0_i32_0 = arith.constant 0 : i32
    %c0_i32_1 = arith.constant 0 : i32
    return %c0_i32, %c0_i32_0 : i32, i32
  }
  func.func @transform_2(%arg0: i32) -> (i32, i32) {
    %c0_i32 = arith.constant 0 : i32
    %c0_i32_0 = arith.constant 0 : i32
    return %arg0, %c0_i32 : i32, i32
  }
}

</mosaic_0001>

<bundles_post_ra>
// kernel: tpu_custom_call.1
= control target key start
LH: loop header
LB: loop body
LE: loop exit
PB: predicated region body
PF: predicated region fallthrough
CT: control target
= control target key end

     0   :  { %7 = vsyncpa [#allocation3], 0  ;;  %s545_s0 = inlined_call_operand.hbm [shape: bf16[128,128], index: 0, kind: input, shape index: {}]   ;;  %s546_s1 = inlined_call_operand.hbm [shape: bf16[128,128], index: 1, kind: input, shape index: {}]   ;;  %s547_s2 = inlined_call_operand.hbm [shape: bf16[128,128], index: 2, kind: output, shape index: {}]  }
   0x1   :  { %8 = vsyncpa [#allocation6], 0 }
   0x2   :  { %9 = vsyncpa [#allocation4], 0  ;;  %s14_s11 = sshll.u32 %s545_s0, 4  ;;  %s507_s12 = smov [#allocation2]   ;;  %s15_s11 = int_to_ptr.hbm [resolvable:$true] %s14_s11 }
   0x3   :  { %s16_s13 = sshll.u32 %s507_s12, 4  ;;  %s27_s16 = sshll.u32 %s546_s1, 4  ;;  %s17_s13 = int_to_ptr.vmem [resolvable:$true] %s16_s13  ;;  %s28_s16 = int_to_ptr.hbm [resolvable:$true] %s27_s16 }
   0x4   :  { %s508_s17 = smov 64   ;;  %s509_s18 = smov 4  }
   0x5   :  { %22 = dma.hbm_to_vmem [thread:$0]  %s15_s11, 1024, %s17_s13, [#allocation3], %s508_s17, %s508_s17, %s509_s18  }
   0x6   :  { %s510_s19 = smov [#allocation5]  }
   0x7   :  { %s29_s20 = sshll.u32 %s510_s19, 4  ;;  %s30_s20 = int_to_ptr.vmem [resolvable:$true] %s29_s20 }
   0x8   :  { %35 = dma.hbm_to_vmem [thread:$0]  %s28_s16, 1024, %s30_s20, [#allocation6], %s508_s17, %s508_s17, %s509_s18  }
   0x9   :  { %501 = dma.done.wait [#allocation3], 1024  }
   0xa   :  { %502 = vsyncadd [#allocation3], 4294966272 }
   0xb   :  { %503 = dma.done.wait [#allocation6], 1024  }
   0xc   :  { %504 = vsyncadd [#allocation6], 4294966272  ;;  %v352_v0 = vld [vmem:[#allocation5 + $0x38] sm:$0xff]  ;;  %v351_v1 = vld [vmem:[#allocation5 + $0x30] sm:$0xff]  ;;  %s511_s0 = smov [#allocation7]   ;;  %s259_s23 = sshll.u32 %s547_s2, 4  ;;  %s260_s23 = int_to_ptr.hbm [resolvable:$true] %s259_s23 }
   0xd   :  { %172 = vmatpush.bf16.msra.mxu0 %v352_v0  ;;  %400 = vmatpush.bf16.msra.mxu1 %v352_v0  ;;  %v350_v2 = vld [vmem:[#allocation5 + $0x28] sm:$0xff]  ;;  %v349_v3 = vld [vmem:[#allocation5 + $0x20] sm:$0xff]  ;;  %v348_v4 = vld [vmem:[#allocation5 + $0x18] sm:$0xff]  ;;  %s257_s1 = sshll.u32 %s511_s0, 4  ;;  %s258_s1 = int_to_ptr.vmem [resolvable:$true] %s257_s1 }
   0xe   :  { %401 = vmatpush.bf16.msra.mxu2 %v352_v0  ;;  %402 = vmatpush.bf16.msra.mxu3 %v352_v0  ;;  %v347_v5 = vld [vmem:[#allocation5 + $0x10] sm:$0xff]  ;;  %v346_v6 = vld [vmem:[#allocation5 + $0x8] sm:$0xff]  ;;  %v345_v7 = vld [vmem:[#allocation5] sm:$0xff] }
   0xf   :  { %v337_v8 = vld [vmem:[#allocation2] sm:$0xff]  ;;  %v339_v9 = vld [vmem:[#allocation2 + $0x10] sm:$0xff]  ;;  %v338_v12 = vld [vmem:[#allocation2 + $0x8] sm:$0xff] }
  0x10   :  { %v341_v10 = vld [vmem:[#allocation2 + $0x20] sm:$0xff]  ;;  %v343_v11 = vld [vmem:[#allocation2 + $0x30] sm:$0xff]  ;;  %v340_v13 = vld [vmem:[#allocation2 + $0x18] sm:$0xff] }
  0x11   :  { %173 = vmatpush.bf16.msra.mxu0 %v351_v1  ;;  %403 = vmatpush.bf16.msra.mxu1 %v351_v1  ;;  %v342_v14 = vld [vmem:[#allocation2 + $0x28] sm:$0xff]  ;;  %v344_v15 = vld [vmem:[#allocation2 + $0x38] sm:$0xff] }
  0x12   :  { %404 = vmatpush.bf16.msra.mxu2 %v351_v1  ;;  %405 = vmatpush.bf16.msra.mxu3 %v351_v1 }
  0x15   :  { %174 = vmatpush.bf16.msra.mxu0 %v350_v2  ;;  %406 = vmatpush.bf16.msra.mxu1 %v350_v2 }
  0x16   :  { %407 = vmatpush.bf16.msra.mxu2 %v350_v2  ;;  %408 = vmatpush.bf16.msra.mxu3 %v350_v2 }
  0x19   :  { %175 = vmatpush.bf16.msra.mxu0 %v349_v3  ;;  %409 = vmatpush.bf16.msra.mxu1 %v349_v3 }
  0x1a   :  { %410 = vmatpush.bf16.msra.mxu2 %v349_v3  ;;  %411 = vmatpush.bf16.msra.mxu3 %v349_v3 }
  0x1d   :  { %176 = vmatpush.bf16.msra.mxu0 %v348_v4  ;;  %412 = vmatpush.bf16.msra.mxu1 %v348_v4 }
  0x1e   :  { %413 = vmatpush.bf16.msra.mxu2 %v348_v4  ;;  %414 = vmatpush.bf16.msra.mxu3 %v348_v4 }
  0x21   :  { %177 = vmatpush.bf16.msra.mxu0 %v347_v5  ;;  %415 = vmatpush.bf16.msra.mxu1 %v347_v5 }
  0x22   :  { %416 = vmatpush.bf16.msra.mxu2 %v347_v5  ;;  %417 = vmatpush.bf16.msra.mxu3 %v347_v5 }
  0x25   :  { %178 = vmatpush.bf16.msra.mxu0 %v346_v6  ;;  %418 = vmatpush.bf16.msra.mxu1 %v346_v6 }
  0x26   :  { %419 = vmatpush.bf16.msra.mxu2 %v346_v6  ;;  %420 = vmatpush.bf16.msra.mxu3 %v346_v6 }
  0x29   :  { %179 = vmatpush.bf16.msra.mxu0 %v345_v7  ;;  %421 = vmatpush.bf16.msra.mxu1 %v345_v7 }
  0x2a   :  { %422 = vmatpush.bf16.msra.mxu2 %v345_v7  ;;  %423 = vmatpush.bf16.msra.mxu3 %v345_v7 }
  0x2c   :  { %180 = vmatmul.bf16.vlgmr.msra.gmra.mxu0 %v337_v8  ;;  %190 = vmatmul.bf16.vlgmr.msra.gmra.mxu1 %v339_v9 }
  0x2d   :  { %200 = vmatmul.bf16.vlgmr.msra.gmra.mxu2 %v341_v10  ;;  %210 = vmatmul.bf16.vlgmr.msra.gmra.mxu3 %v343_v11 }
  0x3c   :  { %185 = vmatmul.bf16.gmra.mxu0 %v338_v12  ;;  %195 = vmatmul.bf16.gmra.mxu1 %v340_v13 }
  0x3d   :  { %205 = vmatmul.bf16.gmra.mxu2 %v342_v14  ;;  %215 = vmatmul.bf16.gmra.mxu3 %v344_v15 }
  0xa9   :  { %v181_v16 = vpop.f32.mrf.mxu0  ;;  %v191_v17 = vpop.f32.mrf.mxu1 }
  0xb0   :  { %v201_v18 = vpop.f32.mrf.mxu2  ;;  %v211_v19 = vpop.f32.mrf.mxu3 }
  0xb1   :  { %v183_v20 = vpop.f32.mrf.mxu0  ;;  %v193_v21 = vpop.f32.mrf.mxu1 }
  0xb2   :  { %v356_v22 = vpack.c.bf16 %v183_v20, %v181_v16  ;;  %v366_v23 = vpack.c.bf16 %v193_v21, %v191_v17 }
  0xb4   :  { %357 = vst [vmem:[#allocation7] sm:$0xff] %v356_v22  }
  0xb5   :  { %394 = vst [vmem:[#allocation7 + $0x10] sm:$0xff] %v366_v23  }
  0xb8   :  { %v203_v24 = vpop.f32.mrf.mxu2  ;;  %v213_v25 = vpop.f32.mrf.mxu3 }
  0xb9   :  { %v376_v26 = vpack.c.bf16 %v203_v24, %v201_v18  ;;  %v386_v27 = vpack.c.bf16 %v213_v25, %v211_v19  ;;  %v186_v28 = vpop.f32.mrf.mxu0  ;;  %v196_v29 = vpop.f32.mrf.mxu1 }
  0xbb   :  { %396 = vst [vmem:[#allocation7 + $0x20] sm:$0xff] %v376_v26  }
  0xbc   :  { %398 = vst [vmem:[#allocation7 + $0x30] sm:$0xff] %v386_v27  }
  0xc0   :  { %v206_v30 = vpop.f32.mrf.mxu2  ;;  %v216_v31 = vpop.f32.mrf.mxu3 }
  0xc1   :  { %v188_v32 = vpop.f32.mrf.mxu0  ;;  %v198_v33 = vpop.f32.mrf.mxu1 }
  0xc2   :  { %v361_v34 = vpack.c.bf16 %v188_v32, %v186_v28  ;;  %v371_v35 = vpack.c.bf16 %v198_v33, %v196_v29 }
  0xc4   :  { %393 = vst [vmem:[#allocation7 + $0x8] sm:$0xff] %v361_v34  }
  0xc5   :  { %395 = vst [vmem:[#allocation7 + $0x18] sm:$0xff] %v371_v35  }
  0xc8   :  { %v208_v36 = vpop.f32.mrf.mxu2  ;;  %v218_v37 = vpop.f32.mrf.mxu3 }
  0xc9   :  { %v381_v38 = vpack.c.bf16 %v208_v36, %v206_v30  ;;  %v391_v39 = vpack.c.bf16 %v218_v37, %v216_v31 }
  0xcb   :  { %397 = vst [vmem:[#allocation7 + $0x28] sm:$0xff] %v381_v38  }
  0xcc   :  { %399 = vst [vmem:[#allocation7 + $0x38] sm:$0xff] %v391_v39  }
  0xcd   :  { %265 = dma.vmem_to_hbm [thread:$0]  %s258_s1, 1024, %s260_s23, [#allocation4], %s508_s17, %s508_s17, %s509_s18  }
  0xce   :  { %505 = dma.done.wait [#allocation4], 1024  }
  0xcf   :  { %506 = vsyncadd [#allocation4], 4294966272 }
  0xd0   :  { %270 = vsyncpa [#allocation3], 1 }
  0xd1   :  { %271 = vsyncpa [#allocation6], 1 }
  0xd2   :  { %272 = vsyncpa [#allocation4], 1 }

</bundles_post_ra>
